<compile_context>
chip_gen: v5e
topology: v5e:2x2
jax: 0.10.0
libtpu: 0.0.40
codegen_flags: <defaults>
</compile_context>

<pallas_src>
import functools

import jax
import jax.numpy as jnp
from jax.experimental import pallas as pl
from jax.experimental.pallas import tpu as pltpu


def _round_up(x: int, m: int) -> int:
    return ((x + m - 1) // m) * m


def policy_net_kernel(x_ref, w1_ref, b1_ref, w2_ref, b2_ref, o_ref):
    # x: (state_dim, tb)   w1: (hidden, state_dim)   b1: (hidden, 1)
    # w2: (action, hidden) b2: (action, 1)           o: (action, tb)
    x = x_ref[...]
    h = jnp.dot(w1_ref[...], x, preferred_element_type=jnp.float32) + b1_ref[...]
    h = jnp.maximum(h, 0.0)
    logits = jnp.dot(w2_ref[...], h, preferred_element_type=jnp.float32) + b2_ref[...]

    # Numerically-stable softmax over the action (sublane) axis. Each lane is one
    # batch element, so padded / ragged batch columns never affect valid ones.
    m = jnp.max(logits, axis=0, keepdims=True)
    e = jnp.exp(logits - m)
    denom = jnp.sum(e, axis=0, keepdims=True)
    o_ref[...] = (e / denom).astype(o_ref.dtype)  # exact divide: rows sum to 1


@functools.partial(jax.jit, static_argnames=("block_b",))
def policy_net_forward(state, w1, b1, w2, b2, *, block_b: int = 32768):
    """state: (B, state_dim) f32; w1: (hidden, state_dim); b1: (hidden,);
    w2: (action, hidden); b2: (action,)  [PyTorch nn.Linear layout].
    Returns (B, action_dim) action probabilities."""
    B, state_dim = state.shape
    hidden_dim = w1.shape[0]
    action_dim = w2.shape[0]

    # Feature-major: put the batch on the lane axis.
    x = state.T                                   # (state_dim, B)
    b1c = b1.reshape(hidden_dim, 1)
    b2c = b2.reshape(action_dim, 1)

    # Pad the batch only to one lane group (128); anything beyond that is a ragged
    # last tile that Pallas masks at the block boundary (no pad to a multiple of tb).
    block_b = _round_up(block_b, 128)
    b_pad = _round_up(B, 128)
    if b_pad != B:
        x = jnp.pad(x, ((0, 0), (0, b_pad - B)))
    tb = min(block_b, b_pad)
    grid = (pl.cdiv(b_pad, tb),)

    flops = 2 * b_pad * (state_dim * hidden_dim + hidden_dim * action_dim)
    bytes_accessed = 4 * (
        b_pad * (state_dim + action_dim)          # state in + probs out
        + hidden_dim * (state_dim + 1)            # W1, b1
        + action_dim * (hidden_dim + 1)           # W2, b2
    )

    out = pl.pallas_call(
        policy_net_kernel,
        out_shape=jax.ShapeDtypeStruct((action_dim, b_pad), jnp.float32),
        grid=grid,
        in_specs=[
            # Batch tile marches along the lane axis.
            pl.BlockSpec((state_dim, tb), lambda i: (0, i)),
            # Parameters: constant block index -> fetched once, VMEM-resident.
            pl.BlockSpec((hidden_dim, state_dim), lambda i: (0, 0)),
            pl.BlockSpec((hidden_dim, 1), lambda i: (0, 0)),
            pl.BlockSpec((action_dim, hidden_dim), lambda i: (0, 0)),
            pl.BlockSpec((action_dim, 1), lambda i: (0, 0)),
        ],
        out_specs=pl.BlockSpec((action_dim, tb), lambda i: (0, i)),
        compiler_params=pltpu.CompilerParams(
            dimension_semantics=("parallel",),    # megacore sharding on v7x (grid >= 2)
            vmem_limit_bytes=32 * 1024 * 1024,    # headroom for large tb (v5e default is 16 MiB)
        ),
        cost_estimate=pl.CostEstimate(
            flops=flops,
            transcendentals=b_pad * action_dim,
            bytes_accessed=bytes_accessed,
        ),
    )(x, w1, b1c, w2, b2c)

    # Back to PyTorch's (B, action_dim). The probs array is tiny (16 B/row), so this
    # slice + transpose outside the kernel is negligible HBM traffic.
    return out[:, :B].T


def init_params(key, state_dim, action_dim, hidden_dim):
    # PyTorch nn.Linear default init: U(-1/sqrt(fan_in), 1/sqrt(fan_in)); (out, in) layout.
    k1, k2, k3, k4 = jax.random.split(key, 4)
    bound1 = 1.0 / jnp.sqrt(state_dim)
    bound2 = 1.0 / jnp.sqrt(hidden_dim)
    w1 = jax.random.uniform(k1, (hidden_dim, state_dim), jnp.float32, -bound1, bound1)
    b1 = jax.random.uniform(k2, (hidden_dim,), jnp.float32, -bound1, bound1)
    w2 = jax.random.uniform(k3, (action_dim, hidden_dim), jnp.float32, -bound2, bound2)
    b2 = jax.random.uniform(k4, (action_dim,), jnp.float32, -bound2, bound2)
    return w1, b1, w2, b2


def _reference(state, w1, b1, w2, b2):
    h = jnp.maximum(state @ w1.T + b1, 0.0)
    return jax.nn.softmax(h @ w2.T + b2, axis=-1)


if __name__ == "__main__":
    state_dim, action_dim, hidden_dim = 8, 4, 32
    batch = 4

    key = jax.random.PRNGKey(0)
    k_params, k_state, k_big = jax.random.split(key, 3)
    w1, b1, w2, b2 = init_params(k_params, state_dim, action_dim, hidden_dim)
    state = jax.random.normal(k_state, (batch, state_dim), jnp.float32)

    # Small per-env-step batch (4 rows -> padded to 128 lanes, single grid step).
    probs = policy_net_forward(state, w1, b1, w2, b2)
    jax.block_until_ready(probs)

    ref = _reference(state, w1, b1, w2, b2)
    assert probs.shape == (batch, action_dim)
    assert jnp.allclose(probs, ref, atol=1e-5), "mismatch vs reference (small batch)"
    assert jnp.allclose(jnp.sum(probs, axis=-1), 1.0, atol=1e-5)

    # Multi-step grid with a ragged last tile: 300 rows -> padded to 384 lanes,
    # tb=256 -> 2 grid steps, second block masked at the array boundary.
    state_big = jax.random.normal(k_big, (300, state_dim), jnp.float32)
    probs_big = policy_net_forward(state_big, w1, b1, w2, b2, block_b=256)
    jax.block_until_ready(probs_big)

    ref_big = _reference(state_big, w1, b1, w2, b2)
    assert probs_big.shape == (300, action_dim)
    assert jnp.allclose(probs_big, ref_big, atol=1e-5), "mismatch vs reference (tiled batch)"
    assert jnp.allclose(jnp.sum(probs_big, axis=-1), 1.0, atol=1e-5)

    print("KERNEL_OK")
</pallas_src>

<mosaic_0001>
module attributes {stable_mosaic.version = 11 : i64} {
  func.func @policy_net_kernel(%arg0: i32, %arg1: memref<8x128xf32, #tpu.memory_space<vmem>>, %arg2: memref<32x8xf32, #tpu.memory_space<vmem>>, %arg3: memref<32x1xf32, #tpu.memory_space<vmem>>, %arg4: memref<4x32xf32, #tpu.memory_space<vmem>>, %arg5: memref<4x1xf32, #tpu.memory_space<vmem>>, %arg6: memref<4x128xf32, #tpu.memory_space<vmem>>) attributes {dimension_semantics = [#tpu.dimension_semantics<parallel>], iteration_bounds = array<i64: 1>, scalar_prefetch = 0 : i64, scratch_operands = 0 : i64, tpu.core_type = #tpu.core_type<tc>, window_params = [{transform_indices = @transform_0, window_bounds = array<i64: 8, 128>}, {pipeline_mode = #tpu.pipeline_mode<synchronous>, transform_indices = @transform_1, window_bounds = array<i64: 32, 8>}, {pipeline_mode = #tpu.pipeline_mode<synchronous>, transform_indices = @transform_2, window_bounds = array<i64: 32, 1>}, {pipeline_mode = #tpu.pipeline_mode<synchronous>, transform_indices = @transform_3, window_bounds = array<i64: 4, 32>}, {pipeline_mode = #tpu.pipeline_mode<synchronous>, transform_indices = @transform_4, window_bounds = array<i64: 4, 1>}, {transform_indices = @transform_5, window_bounds = array<i64: 4, 128>}]} {
    %c0 = arith.constant 0 : index
    %c0_0 = arith.constant 0 : index
    %0 = vector.load %arg1[%c0, %c0_0] : memref<8x128xf32, #tpu.memory_space<vmem>>, vector<8x128xf32>
    %c0_1 = arith.constant 0 : index
    %c0_2 = arith.constant 0 : index
    %1 = vector.load %arg2[%c0_1, %c0_2] : memref<32x8xf32, #tpu.memory_space<vmem>>, vector<32x8xf32>
    %cst = arith.constant dense<0.000000e+00> : vector<32x128xf32>
    %2 = tpu.matmul %1, %0, %cst {dimension_numbers = #tpu.dot_dimension_numbers<[1], [0], [0], [1], [0, 0, 1, 1], [], []>} : vector<32x8xf32>, vector<8x128xf32>, vector<32x128xf32> -> vector<32x128xf32>
    %c0_3 = arith.constant 0 : index
    %c0_4 = arith.constant 0 : index
    %3 = vector.load %arg3[%c0_3, %c0_4] : memref<32x1xf32, #tpu.memory_space<vmem>>, vector<32x1xf32>
    %4 = vector.broadcast %3 : vector<32x1xf32> to vector<32x128xf32>
    %5 = arith.addf %2, %4 : vector<32x128xf32>
    %cst_5 = arith.constant 0.000000e+00 : f32
    %6 = vector.broadcast %cst_5 : f32 to vector<32x128xf32>
    %7 = arith.maximumf %5, %6 : vector<32x128xf32>
    %c0_6 = arith.constant 0 : index
    %c0_7 = arith.constant 0 : index
    %8 = vector.load %arg4[%c0_6, %c0_7] : memref<4x32xf32, #tpu.memory_space<vmem>>, vector<4x32xf32>
    %cst_8 = arith.constant dense<0.000000e+00> : vector<4x128xf32>
    %9 = tpu.matmul %8, %7, %cst_8 {dimension_numbers = #tpu.dot_dimension_numbers<[1], [0], [0], [1], [0, 0, 1, 1], [], []>} : vector<4x32xf32>, vector<32x128xf32>, vector<4x128xf32> -> vector<4x128xf32>
    %c0_9 = arith.constant 0 : index
    %c0_10 = arith.constant 0 : index
    %10 = vector.load %arg5[%c0_9, %c0_10] : memref<4x1xf32, #tpu.memory_space<vmem>>, vector<4x1xf32>
    %11 = vector.broadcast %10 : vector<4x1xf32> to vector<4x128xf32>
    %12 = arith.addf %9, %11 : vector<4x128xf32>
    %cst_11 = arith.constant dense<0xFF800000> : vector<128xf32>
    %13 = vector.multi_reduction <maximumf>, %12, %cst_11 [0] : vector<4x128xf32> to vector<128xf32>
    %14 = vector.shape_cast %13 : vector<128xf32> to vector<1x128xf32>
    %15 = vector.broadcast %14 : vector<1x128xf32> to vector<4x128xf32>
    %16 = arith.subf %12, %15 : vector<4x128xf32>
    %17 = math.exp %16 : vector<4x128xf32>
    %cst_12 = arith.constant dense<0.000000e+00> : vector<128xf32>
    %18 = vector.multi_reduction <add>, %17, %cst_12 [0] : vector<4x128xf32> to vector<128xf32>
    %19 = vector.shape_cast %18 : vector<128xf32> to vector<1x128xf32>
    %20 = vector.broadcast %19 : vector<1x128xf32> to vector<4x128xf32>
    %21 = arith.divf %17, %20 : vector<4x128xf32>
    %c0_13 = arith.constant 0 : index
    %c0_14 = arith.constant 0 : index
    %22 = vector.load %arg6[%c0_13, %c0_14] : memref<4x128xf32, #tpu.memory_space<vmem>>, vector<4x128xf32>
    tpu.vector_store %arg6[%c0_13, %c0_14], %21 {strides = array<i32>} : memref<4x128xf32, #tpu.memory_space<vmem>>, vector<4x128xf32>,
    return
  }
  func.func @transform_0(%arg0: i32) -> (i32, i32) {
    %c0_i32 = arith.constant 0 : i32
    %c0_i32_0 = arith.constant 0 : i32
    return %c0_i32, %arg0 : i32, i32
  }
  func.func @transform_1(%arg0: i32) -> (i32, i32) {
    %c0_i32 = arith.constant 0 : i32
    %c0_i32_0 = arith.constant 0 : i32
    %c0_i32_1 = arith.constant 0 : i32
    return %c0_i32, %c0_i32_0 : i32, i32
  }
  func.func @transform_2(%arg0: i32) -> (i32, i32) {
    %c0_i32 = arith.constant 0 : i32
    %c0_i32_0 = arith.constant 0 : i32
    %c0_i32_1 = arith.constant 0 : i32
    return %c0_i32, %c0_i32_0 : i32, i32
  }
  func.func @transform_3(%arg0: i32) -> (i32, i32) {
    %c0_i32 = arith.constant 0 : i32
    %c0_i32_0 = arith.constant 0 : i32
    %c0_i32_1 = arith.constant 0 : i32
    return %c0_i32, %c0_i32_0 : i32, i32
  }
  func.func @transform_4(%arg0: i32) -> (i32, i32) {
    %c0_i32 = arith.constant 0 : i32
    %c0_i32_0 = arith.constant 0 : i32
    %c0_i32_1 = arith.constant 0 : i32
    return %c0_i32, %c0_i32_0 : i32, i32
  }
  func.func @transform_5(%arg0: i32) -> (i32, i32) {
    %c0_i32 = arith.constant 0 : i32
    %c0_i32_0 = arith.constant 0 : i32
    return %c0_i32, %arg0 : i32, i32
  }
}

</mosaic_0001>

<bundles_post_ra>
// kernel: policy_net_forward.1
= control target key start
LH: loop header
LB: loop body
LE: loop exit
PB: predicated region body
PF: predicated region fallthrough
CT: control target
= control target key end

     0   :  { %vm49_vm0 = vcmask 64512   ;;  %v179_v3 = vmov 0   ;;  %vm102_vm1 = vcmask 261120   ;;  %vm126_vm2 = vcmask 1043456   ;;  %s250_s0 = inlined_call_operand.vmem [shape: f32[8,128], index: 0, kind: input, shape index: {}]   ;;  %s251_s1 = inlined_call_operand.vmem [shape: f32[32,8], index: 1, kind: input, shape index: {}]   ;;  %s252_s2 = inlined_call_operand.vmem [shape: f32[32,1], index: 2, kind: input, shape index: {}]   ;;  %s253_s4 = inlined_call_operand.vmem [shape: f32[4,1], index: 4, kind: input, shape index: {}]   ;;  %s254_s3 = inlined_call_operand.vmem [shape: f32[4,32], index: 3, kind: input, shape index: {}]   ;;  %s255_s5 = inlined_call_operand.vmem [shape: f32[4,128], index: 5, kind: output, shape index: {}]  }
   0x1   :  { %v20_v0 = vld [vmem:[%s250_s0] sm:$0xff]  ;;  %v22_v1 = vld [vmem:[%s251_s1 + $0x8] sm:$0xff]  ;;  %v24_v2 = vld [vmem:[%s251_s1 + $0x18] sm:$0xff]  ;;  %172 = vset.pattern.permute.xlu0 %v179_v3  ;;  %173 = vset.pattern.permute.xlu1 %v179_v3 }
   0x2   :  { %169 = vmatpush.msra.mxu2 %v20_v0  ;;  %170 = vmatpush.msra.mxu3 %v20_v0  ;;  %v28_v4 = vld [vmem:[%s252_s2 + $0x18] sm:$0xff]  ;;  %v21_v5 = vld [vmem:[%s251_s1] sm:$0xff]  ;;  %v26_v6 = vld [vmem:[%s252_s2 + $0x8] sm:$0xff] }
   0x3   :  { %165 = vmatmul.msk.f32.vlgmr.msra.gmra.mxu2 %vm49_vm0, %v22_v1  ;;  %167 = vmatmul.msk.f32.vlgmr.msra.gmra.mxu3 %vm49_vm0, %v24_v2  ;;  %v23_v7 = vld [vmem:[%s251_s1 + $0x10] sm:$0xff]  ;;  %v25_v9 = vld [vmem:[%s252_s2] sm:$0xff] }
   0x4   :  { %46 = vperm.xlu0 %172, %v28_v4   ;;  %77 = vmatpush.msra.mxu0 %v20_v0  ;;  %v27_v8 = vld [vmem:[%s252_s2 + $0x10] sm:$0xff]  ;;  %v96_v10 = vld [vmem:[%s253_s4] sm:$0xf] }
   0x5   :  { %164 = vmatmul.msk.f32.vlgmr.msra.gmra.mxu0 %vm49_vm0, %v21_v5  ;;  %36 = vperm.xlu1 %173, %v26_v6   ;;  %v95_v27 = vld [vmem:[%s254_s3] sm:$0xf] }
   0x6   :  { %174 = vset.pattern.permute.xlu2 %v179_v3 }
   0x7   :  { %99 = vperm.xlu2 %174, %v96_v10  }
   0xb   :  { %166 = vmatmul.msk.f32.gmra.mxu2 %vm49_vm0, %v23_v7 }
   0xc   :  { %41 = vperm.xlu0 %172, %v27_v8  }
   0xd   :  { %31 = vperm.xlu1 %173, %v25_v9  }
  0x61   :  { %v100_v28 = vpop.permute.xlu2 %99 }
  0x76   :  { %v47_v11 = vpop.permute.xlu0 %46 }
  0x77   :  { %v37_v12 = vpop.permute.xlu1 %36 }
  0x7e   :  { %v42_v17 = vpop.permute.xlu0 %41 }
  0x7f   :  { %v32_v18 = vpop.permute.xlu1 %31 }
  0x82   :  { %v79_v19 = vpop.f32.mrf.mxu0 }
  0x83   :  { %v80_v23 = vadd.f32 %v79_v19, %v32_v18 }
  0x85   :  { %v91_v26 = vmax.f32 %v80_v23, 0.0 }
  0x86   :  { %v82_v13 = vpop.f32.mrf.mxu2  ;;  %v88_v14 = vpop.f32.mrf.mxu3 }
  0x87   :  { %v89_v15 = vadd.f32 %v88_v14, %v47_v11  ;;  %v83_v21 = vadd.f32 %v82_v13, %v37_v12 }
  0x89   :  { %v94_v16 = vmax.f32 %v89_v15, 0.0  ;;  %v92_v25 = vmax.f32 %v83_v21, 0.0 }
  0x8b   :  { %118 = vmatpush.msra.mxu1 %v94_v16 }
  0x8e   :  { %v85_v20 = vpop.f32.mrf.mxu2 }
  0x8f   :  { %v86_v22 = vadd.f32 %v85_v20, %v42_v17 }
  0x91   :  { %v93_v24 = vmax.f32 %v86_v22, 0.0 }
  0x93   :  { %119 = vmatpush.msra.mxu1 %v93_v24 }
  0x95   :  { %120 = vmatpush.msra.mxu1 %v92_v25 }
  0x97   :  { %121 = vmatpush.msra.mxu1 %v91_v26 }
  0x98   :  { %168 = vmatmul.msk.f32.vlgmr.msra.gmra.mxu1 %vm102_vm1, %v95_v27 }
 0x115   :  { %v123_v29 = vpop.f32.mrf.mxu1 }
 0x116   :  { %v124_v30 = vadd.f32 %v123_v29, %v100_v28 }
 0x118   :  { %v127_v31 = vsel %vm126_vm2, %v124_v30, -inf }
 0x119   :  { %v128_v32 = vrot.slane %v127_v31, 4 }
 0x11b   :  { %v129_v33 = vmax.f32 %v127_v31, %v128_v32 }
 0x11d   :  { %v130_v34 = vrot.slane %v129_v33, 2 }
 0x11f   :  { %v131_v35 = vmax.f32 %v129_v33, %v130_v34 }
 0x121   :  { %v132_v36 = vrot.slane %v131_v35, 1 }
 0x123   :  { %v133_v37 = vmax.f32 %v131_v35, %v132_v36 }
 0x125   :  { %v134_v38 = vsub.f32 %v124_v30, %v133_v37 }
 0x127   :  { %v135_v39 = vmul.f32 1.442695, %v134_v38 }
 0x129   :  { %175 = vpow2.f32 %v135_v39 }
 0x12f   :  { %v176_v40 = vpop.eup %175 }
 0x130   :  { %v137_v41 = vsel %vm126_vm2, %v176_v40, 0.0 }
 0x131   :  { %v138_v42 = vrot.slane %v137_v41, 4 }
 0x133   :  { %v139_v43 = vadd.f32 %v138_v42, %v137_v41 }
 0x135   :  { %v140_v44 = vrot.slane %v139_v43, 2 }
 0x137   :  { %v141_v45 = vadd.f32 %v140_v44, %v139_v43 }
 0x139   :  { %v142_v46 = vrot.slane %v141_v45, 1 }
 0x13b   :  { %v143_v47 = vadd.f32 %v142_v46, %v141_v45 }
 0x13d   :  { %177 = vrcp.f32 %v143_v47  ;;  %v155_v51 = vand.u32 2147483648, %v143_v47  ;;  %v153_v53 = vand.u32 2147483647, %v143_v47  ;;  %vm149_vm4 = vweird.f32 %v143_v47 }
 0x13f   :  { %v156_v55 = vor.u32 1.1754944e-38, %v155_v51  ;;  %vm154_vm6 = vcmp.eq.f32.partialorder %v153_v53, 8.507059e+37 }
 0x143   :  { %v178_v48 = vpop.eup %177 }
 0x144   :  { %v145_v49 = vmul.f32 %v178_v48, %v143_v47  ;;  %vm150_vm3 = vweird.f32 %v178_v48 }
 0x145   :  { %vm151_vm5 = vmor %vm149_vm4, %vm150_vm3 }
 0x146   :  { %v146_v50 = vsub.f32 1.0, %v145_v49 }
 0x148   :  { %v147_v52 = vmul.f32 %v178_v48, %v146_v50 }
 0x14a   :  { %v148_v54 = vadd.f32 %v178_v48, %v147_v52 }
 0x14c   :  { %v152_v56 = vsel %vm151_vm5, %v178_v48, %v148_v54 }
 0x14d   :  { %v157_v57 = vsel %vm154_vm6, %v156_v55, %v152_v56 }
 0x14e   :  { %v158_v58 = vmul.f32 %v176_v40, %v157_v57 }
 0x150   :  { %159 = vst [vmem:[%s255_s5] sm:$0xf] %v158_v58 }

</bundles_post_ra>
